<compile_context>
chip_gen: v7x
topology: tpu7x:2x2x1
jax: 0.10.0
libtpu: 0.0.40
codegen_flags: <defaults>
</compile_context>

<pallas_src>
import functools

import jax
import jax.numpy as jnp
from jax.experimental import pallas as pl
from jax.experimental.pallas import tpu as pltpu

BN_EPS = 1e-5  # nn.BatchNorm2d default


def _round_up(x, m):
    return ((x + m - 1) // m) * m


# ---------------- pass 1: conv (im2col matmul) + partial BN stats ------------
def conv_stats_kernel(xcol_ref, w_ref, y_ref, stats_ref):
    # [TM, K] bf16 @ [K, C] bf16 -> f32 (MXU, f32 accumulation).
    y = jnp.dot(xcol_ref[...], w_ref[...], preferred_element_type=jnp.float32)
    y_ref[...] = y
    # Per-tile, per-channel partial sums for the batch statistics.
    # Padded (all-zero) rows contribute exactly 0 to both sums, so no masking
    # is needed here; the host divides by the true row count M.
    ps = jnp.sum(y, axis=0, keepdims=True)        # [1, C]
    pss = jnp.sum(y * y, axis=0, keepdims=True)   # [1, C]
    pad = jnp.zeros((6, y.shape[1]), jnp.float32)
    stats_ref[...] = jnp.concatenate([ps, pss, pad], axis=0)[None, :, :]


# ---------------- pass 2: apply BN (y * scale + shift) -----------------------
def bn_apply_kernel(y_ref, scale_ref, shift_ref, o_ref):
    o_ref[...] = (y_ref[...] * scale_ref[...] + shift_ref[...]).astype(o_ref.dtype)


# ------------------------------- wrapper -------------------------------------
@functools.partial(jax.jit, static_argnames=("stride", "padding"))
def conv_bn_forward(x, weight, gamma, beta, *, stride, padding):
    """x: [N, Cin, H, W], weight: [Cout, Cin, KH, KW], gamma/beta: [Cout]."""
    N, Cin, H, W = x.shape
    Cout, _, KH, KW = weight.shape
    OH = (H + 2 * padding - KH) // stride + 1
    OW = (W + 2 * padding - KW) // stride + 1
    M = N * OH * OW
    K = Cin * KH * KW

    # ---- im2col (host-side JAX glue) ----
    # TODO(synk): fold the KH*KW taps into the kernel grid (per-tap matmul
    # accumulation over the padded NHWC input) to avoid this KH*KW-expanded
    # copy in HBM for large, memory-bound convs.
    xp = jnp.pad(x, ((0, 0), (0, 0), (padding, padding), (padding, padding)))
    taps = []
    for kh in range(KH):
        for kw in range(KW):
            taps.append(
                xp[:, :, kh:kh + stride * OH:stride, kw:kw + stride * OW:stride]
            )  # [N, Cin, OH, OW]
    patches = jnp.stack(taps, axis=2)                      # [N, Cin, KH*KW, OH, OW]
    xcol = patches.transpose(0, 3, 4, 1, 2).reshape(M, K)  # K order = (Cin, KH, KW)
    wmat = weight.reshape(Cout, K).T                       # [K, Cout]

    # ---- tiling: grid over M (parallel); Cout / K stay as whole blocks ----
    TM = min(256, _round_up(M, 16))          # bf16 sublane multiple; 256-aligned
    M_pad = _round_up(M, TM)
    K_pad = _round_up(K, 16)                 # do NOT pad K to 128
    C_pad = _round_up(Cout, 128)             # lane-dense output
    m_tiles = M_pad // TM

    xcol_p = jnp.pad(xcol, ((0, M_pad - M), (0, K_pad - K))).astype(jnp.bfloat16)
    wmat_p = jnp.pad(wmat, ((0, K_pad - K), (0, C_pad - Cout))).astype(jnp.bfloat16)

    cparams = pltpu.CompilerParams(
        dimension_semantics=("parallel",),
        vmem_limit_bytes=32 * 1024 * 1024,
    )

    # ---- pass 1: conv result tiles + per-tile partial BN stats ----
    y_p, stats = pl.pallas_call(
        conv_stats_kernel,
        out_shape=(
            jax.ShapeDtypeStruct((M_pad, C_pad), jnp.float32),
            jax.ShapeDtypeStruct((m_tiles, 8, C_pad), jnp.float32),
        ),
        grid_spec=pltpu.PrefetchScalarGridSpec(
            num_scalar_prefetch=0,
            grid=(m_tiles,),
            in_specs=[
                pl.BlockSpec((TM, K_pad), lambda i: (i, 0)),      # X_col tile
                pl.BlockSpec((K_pad, C_pad), lambda i: (0, 0)),   # W (resident)
            ],
            out_specs=[
                pl.BlockSpec((TM, C_pad), lambda i: (i, 0)),      # y tile
                pl.BlockSpec((1, 8, C_pad), lambda i: (i, 0, 0)), # partial stats
            ],
        ),
        compiler_params=cparams,
    )(xcol_p, wmat_p)

    # ---- finalize BN batch statistics (tiny; divide by the true M) ----
    total = jnp.sum(stats[:, 0, :], axis=0)        # [C_pad]
    total_sq = jnp.sum(stats[:, 1, :], axis=0)     # [C_pad]
    mean = total / M
    var = jnp.maximum(total_sq / M - mean * mean, 0.0)   # guard f32 cancellation
    inv = jax.lax.rsqrt(var + BN_EPS)
    gamma_p = jnp.pad(gamma.astype(jnp.float32), (0, C_pad - Cout))
    beta_p = jnp.pad(beta.astype(jnp.float32), (0, C_pad - Cout))
    scale = (gamma_p * inv).reshape(1, C_pad)
    shift = (beta_p - mean * gamma_p * inv).reshape(1, C_pad)

    # ---- pass 2: normalize tiles ----
    out_p = pl.pallas_call(
        bn_apply_kernel,
        out_shape=jax.ShapeDtypeStruct((M_pad, C_pad), jnp.float32),
        grid_spec=pltpu.PrefetchScalarGridSpec(
            num_scalar_prefetch=0,
            grid=(m_tiles,),
            in_specs=[
                pl.BlockSpec((TM, C_pad), lambda i: (i, 0)),
                pl.BlockSpec((1, C_pad), lambda i: (0, 0)),
                pl.BlockSpec((1, C_pad), lambda i: (0, 0)),
            ],
            out_specs=pl.BlockSpec((TM, C_pad), lambda i: (i, 0)),
        ),
        compiler_params=cparams,
    )(y_p, scale, shift)

    # ---- un-pad and restore NCHW ----
    out = out_p[:M, :Cout].reshape(N, OH, OW, Cout).transpose(0, 3, 1, 2)
    return out


# ------------------------------ reference ------------------------------------
def conv_bn_reference(x, weight, gamma, beta, *, stride, padding):
    y = jax.lax.conv_general_dilated(
        x, weight,
        window_strides=(stride, stride),
        padding=[(padding, padding), (padding, padding)],
        dimension_numbers=("NCHW", "OIHW", "NCHW"),
    )
    mean = jnp.mean(y, axis=(0, 2, 3), keepdims=True)
    var = jnp.mean(jnp.square(y - mean), axis=(0, 2, 3), keepdims=True)
    g = gamma.reshape(1, -1, 1, 1)
    b = beta.reshape(1, -1, 1, 1)
    return (y - mean) * jax.lax.rsqrt(var + BN_EPS) * g + b


# --------------------------------- main ---------------------------------------
if __name__ == "__main__":
    # ConvBN(in=4, out=8, kernel=3, stride=1, pad=1), small shapes.
    N, Cin, H, W = 2, 4, 16, 16
    Cout, KH, KW = 8, 3, 3
    stride, padding = 1, 1

    key = jax.random.PRNGKey(0)
    kx, kw = jax.random.split(key)
    x = jax.random.normal(kx, (N, Cin, H, W), jnp.float32)
    fan_in = Cin * KH * KW
    weight = jax.random.normal(kw, (Cout, Cin, KH, KW), jnp.float32) / jnp.sqrt(
        jnp.float32(fan_in)
    )
    # BatchNorm2d default init: weight (gamma) = 1, bias (beta) = 0.
    gamma = jnp.ones((Cout,), jnp.float32)
    beta = jnp.zeros((Cout,), jnp.float32)

    out = conv_bn_forward(x, weight, gamma, beta, stride=stride, padding=padding)
    out = jax.block_until_ready(out)

    ref = conv_bn_reference(x, weight, gamma, beta, stride=stride, padding=padding)
    assert out.shape == (N, Cout, H, W), out.shape
    # bf16 matmul inputs (f32 accumulation) vs a pure-f32 reference: loose tol.
    assert jnp.allclose(out, ref, atol=5e-2, rtol=5e-2), float(
        jnp.max(jnp.abs(out - ref))
    )
    print("KERNEL_OK")
</pallas_src>

<mosaic_0001>
module attributes {stable_mosaic.version = 11 : i64} {
  func.func @conv_stats_kernel(%arg0: i32, %arg1: memref<256x48xbf16, #tpu.memory_space<vmem>>, %arg2: memref<48x128xbf16, #tpu.memory_space<vmem>>, %arg3: memref<256x128xf32, #tpu.memory_space<vmem>>, %arg4: memref<1x8x128xf32, #tpu.memory_space<vmem>>) attributes {dimension_semantics = [#tpu.dimension_semantics<parallel>], iteration_bounds = array<i64: 2>, scalar_prefetch = 0 : i64, scratch_operands = 0 : i64, tpu.core_type = #tpu.core_type<tc>, window_params = [{transform_indices = @transform_0, window_bounds = array<i64: 256, 48>}, {pipeline_mode = #tpu.pipeline_mode<synchronous>, transform_indices = @transform_1, window_bounds = array<i64: 48, 128>}, {transform_indices = @transform_2, window_bounds = array<i64: 256, 128>}, {transform_indices = @transform_3, window_bounds = array<i64: 1, 8, 128>}]} {
    %c0 = arith.constant 0 : index
    %c0_0 = arith.constant 0 : index
    %0 = vector.load %arg1[%c0, %c0_0] : memref<256x48xbf16, #tpu.memory_space<vmem>>, vector<256x48xbf16>
    %c0_1 = arith.constant 0 : index
    %c0_2 = arith.constant 0 : index
    %1 = vector.load %arg2[%c0_1, %c0_2] : memref<48x128xbf16, #tpu.memory_space<vmem>>, vector<48x128xbf16>
    %cst = arith.constant dense<0.000000e+00> : vector<256x128xf32>
    %2 = tpu.matmul %0, %1, %cst {dimension_numbers = #tpu.dot_dimension_numbers<[1], [0], [0], [1], [0, 0, 1, 1], [], []>} : vector<256x48xbf16>, vector<48x128xbf16>, vector<256x128xf32> -> vector<256x128xf32>
    %c0_3 = arith.constant 0 : index
    %c0_4 = arith.constant 0 : index
    %3 = vector.load %arg3[%c0_3, %c0_4] : memref<256x128xf32, #tpu.memory_space<vmem>>, vector<256x128xf32>
    tpu.vector_store %arg3[%c0_3, %c0_4], %2 {strides = array<i32>} : memref<256x128xf32, #tpu.memory_space<vmem>>, vector<256x128xf32>,
    %cst_5 = arith.constant dense<0.000000e+00> : vector<128xf32>
    %4 = vector.multi_reduction <add>, %2, %cst_5 [0] : vector<256x128xf32> to vector<128xf32>
    %5 = vector.shape_cast %4 : vector<128xf32> to vector<1x128xf32>
    %6 = arith.mulf %2, %2 : vector<256x128xf32>
    %cst_6 = arith.constant dense<0.000000e+00> : vector<128xf32>
    %7 = vector.multi_reduction <add>, %6, %cst_6 [0] : vector<256x128xf32> to vector<128xf32>
    %8 = vector.shape_cast %7 : vector<128xf32> to vector<1x128xf32>
    %cst_7 = arith.constant 0.000000e+00 : f32
    %9 = vector.broadcast %cst_7 : f32 to vector<6x128xf32>
    %10 = tpu.concatenate %5, %8, %9 in 0 : vector<1x128xf32>, vector<1x128xf32>, vector<6x128xf32> -> vector<8x128xf32>
    %11 = vector.shape_cast %10 : vector<8x128xf32> to vector<1x8x128xf32>
    %c0_8 = arith.constant 0 : index
    %c0_9 = arith.constant 0 : index
    %c0_10 = arith.constant 0 : index
    %12 = vector.load %arg4[%c0_8, %c0_9, %c0_10] : memref<1x8x128xf32, #tpu.memory_space<vmem>>, vector<1x8x128xf32>
    tpu.vector_store %arg4[%c0_8, %c0_9, %c0_10], %11 {strides = array<i32>} : memref<1x8x128xf32, #tpu.memory_space<vmem>>, vector<1x8x128xf32>,
    return
  }
  func.func @transform_0(%arg0: i32) -> (i32, i32) {
    %c0_i32 = arith.constant 0 : i32
    %c0_i32_0 = arith.constant 0 : i32
    return %arg0, %c0_i32 : i32, i32
  }
  func.func @transform_1(%arg0: i32) -> (i32, i32) {
    %c0_i32 = arith.constant 0 : i32
    %c0_i32_0 = arith.constant 0 : i32
    %c0_i32_1 = arith.constant 0 : i32
    return %c0_i32, %c0_i32_0 : i32, i32
  }
  func.func @transform_2(%arg0: i32) -> (i32, i32) {
    %c0_i32 = arith.constant 0 : i32
    %c0_i32_0 = arith.constant 0 : i32
    return %arg0, %c0_i32 : i32, i32
  }
  func.func @transform_3(%arg0: i32) -> (i32, i32, i32) {
    %c0_i32 = arith.constant 0 : i32
    %c0_i32_0 = arith.constant 0 : i32
    %c0_i32_1 = arith.constant 0 : i32
    return %arg0, %c0_i32, %c0_i32_0 : i32, i32, i32
  }
}

module attributes {stable_mosaic.version = 11 : i64} {
  func.func @bn_apply_kernel(%arg0: i32, %arg1: memref<256x128xf32, #tpu.memory_space<vmem>>, %arg2: memref<1x128xf32, #tpu.memory_space<vmem>>, %arg3: memref<1x128xf32, #tpu.memory_space<vmem>>, %arg4: memref<256x128xf32, #tpu.memory_space<vmem>>) attributes {dimension_semantics = [#tpu.dimension_semantics<parallel>], iteration_bounds = array<i64: 2>, scalar_prefetch = 0 : i64, scratch_operands = 0 : i64, tpu.core_type = #tpu.core_type<tc>, window_params = [{transform_indices = @transform_0, window_bounds = array<i64: 256, 128>}, {pipeline_mode = #tpu.pipeline_mode<synchronous>, transform_indices = @transform_1, window_bounds = array<i64: 1, 128>}, {pipeline_mode = #tpu.pipeline_mode<synchronous>, transform_indices = @transform_2, window_bounds = array<i64: 1, 128>}, {transform_indices = @transform_3, window_bounds = array<i64: 256, 128>}]} {
    %c0 = arith.constant 0 : index
    %c0_0 = arith.constant 0 : index
    %0 = vector.load %arg1[%c0, %c0_0] : memref<256x128xf32, #tpu.memory_space<vmem>>, vector<256x128xf32>
    %c0_1 = arith.constant 0 : index
    %c0_2 = arith.constant 0 : index
    %1 = vector.load %arg2[%c0_1, %c0_2] : memref<1x128xf32, #tpu.memory_space<vmem>>, vector<1x128xf32>
    %2 = vector.broadcast %1 : vector<1x128xf32> to vector<256x128xf32>
    %3 = arith.mulf %0, %2 : vector<256x128xf32>
    %c0_3 = arith.constant 0 : index
    %c0_4 = arith.constant 0 : index
    %4 = vector.load %arg3[%c0_3, %c0_4] : memref<1x128xf32, #tpu.memory_space<vmem>>, vector<1x128xf32>
    %5 = vector.broadcast %4 : vector<1x128xf32> to vector<256x128xf32>
    %6 = arith.addf %3, %5 : vector<256x128xf32>
    %c0_5 = arith.constant 0 : index
    %c0_6 = arith.constant 0 : index
    %7 = vector.load %arg4[%c0_5, %c0_6] : memref<256x128xf32, #tpu.memory_space<vmem>>, vector<256x128xf32>
    tpu.vector_store %arg4[%c0_5, %c0_6], %6 {strides = array<i32>} : memref<256x128xf32, #tpu.memory_space<vmem>>, vector<256x128xf32>,
    return
  }
  func.func @transform_0(%arg0: i32) -> (i32, i32) {
    %c0_i32 = arith.constant 0 : i32
    %c0_i32_0 = arith.constant 0 : i32
    return %arg0, %c0_i32 : i32, i32
  }
  func.func @transform_1(%arg0: i32) -> (i32, i32) {
    %c0_i32 = arith.constant 0 : i32
    %c0_i32_0 = arith.constant 0 : i32
    %c0_i32_1 = arith.constant 0 : i32
    return %c0_i32, %c0_i32_0 : i32, i32
  }
  func.func @transform_2(%arg0: i32) -> (i32, i32) {
    %c0_i32 = arith.constant 0 : i32
    %c0_i32_0 = arith.constant 0 : i32
    %c0_i32_1 = arith.constant 0 : i32
    return %c0_i32, %c0_i32_0 : i32, i32
  }
  func.func @transform_3(%arg0: i32) -> (i32, i32) {
    %c0_i32 = arith.constant 0 : i32
    %c0_i32_0 = arith.constant 0 : i32
    return %arg0, %c0_i32 : i32, i32
  }
}

</mosaic_0001>

<bundles_post_ra>
// kernel: conv_bn_forward.3
= control target key start
LH: loop header
LB: loop body
LE: loop exit
PB: predicated region body
PF: predicated region fallthrough
CT: control target
= control target key end

     0   :  { %s421_s12 = smov 0   ;;  %s580_s0 = inlined_call_operand.vmem [shape: f32[512,128], index: 0, kind: input, shape index: {}]   ;;  %s581_s1 = inlined_call_operand.vmem [shape: f32[1,128], index: 1, kind: input, shape index: {}]   ;;  %s582_s2 = inlined_call_operand.vmem [shape: f32[1,128], index: 2, kind: input, shape index: {}]   ;;  %s583_s3 = inlined_call_operand.vmem [shape: f32[512,128], index: 3, kind: output, shape index: {}]  }
   0x1 LB: > { %s372_s13 = sadd.s32 4294967295, %s399_s12   ;;  %p376_p0 = scmp.ge.s32.totalorder %s399_s12, 1  ;;  %s399_s12 = sphi %s421_s12, %s13_s12  }
   0x2   : > { %p138_p1 = scmp.lt.s32.totalorder %s399_s12, 3 }
   0x4   : > { %p139_p2 = pnand %p376_p0, %p138_p1 }
   0x5   : > { %s377_s14 = sshll.u32 (!%p139_p2), %s372_s13, 5  ;;  %v432_v0 = vld [vmem:[%s581_s1] ss:$0 sm:$0xff] (!%p139_p2) }
   0x6   : > { %142 = sbr.rel (%p139_p2) target bundleno = 40 (0x28), region = 32  ;;  %p163_p3 = scmp.lt.s32.totalorder (!%p139_p2), %s377_s14, 63  ;;  %v442_v1 = vld [vmem:[%s582_s2] ss:$0 sm:$0xff] (!%p139_p2) }
   0xd   : > { %s585_s14 = smov (!%p163_p3, %s377_s14), 63 }
   0xe   : > { %s378_s15 = sshll.u32 %s585_s14, 3 }
   0xf   : > { %s437_s20 = scalar_lea.vmem %s580_s0, %s378_s15  ;;  %s456_s25 = scalar_lea.vmem %s583_s3, %s378_s15 }
  0x10   : > { %v174_v2 = vld [vmem:[%s437_s20] sm:$0xff]  ;;  %v175_v3 = vld [vmem:[%s437_s20 + $0x8] sm:$0xff]  ;;  %v176_v4 = vld [vmem:[%s437_s20 + $0x10] sm:$0xff] }
  0x11   : > { %v213_v5 = vmul.f32 %v432_v0, %v174_v2  ;;  %v214_v6 = vmul.f32 %v432_v0, %v175_v3  ;;  %v215_v7 = vmul.f32 %v432_v0, %v176_v4  ;;  %v177_v8 = vld [vmem:[%s437_s20 + $0x18] sm:$0xff]  ;;  %v178_v9 = vld [vmem:[%s437_s20 + $0x20] sm:$0xff]  ;;  %v179_v10 = vld [vmem:[%s437_s20 + $0x28] sm:$0xff] }
  0x12   : > { %v216_v11 = vmul.f32 %v432_v0, %v177_v8  ;;  %v217_v12 = vmul.f32 %v432_v0, %v178_v9  ;;  %v218_v13 = vmul.f32 %v432_v0, %v179_v10  ;;  %v180_v14 = vld [vmem:[%s437_s20 + $0x30] sm:$0xff]  ;;  %v181_v15 = vld [vmem:[%s437_s20 + $0x38] sm:$0xff]  ;;  %v182_v16 = vld [vmem:[%s437_s20 + $0x40] sm:$0xff] }
  0x13   : > { %v252_v17 = vadd.f32 %v442_v1, %v213_v5  ;;  %v253_v18 = vadd.f32 %v442_v1, %v214_v6  ;;  %v254_v19 = vadd.f32 %v442_v1, %v215_v7  ;;  %v219_v20 = vmul.f32 %v432_v0, %v180_v14  ;;  %v183_v21 = vld [vmem:[%s437_s20 + $0x48] sm:$0xff]  ;;  %v184_v22 = vld [vmem:[%s437_s20 + $0x50] sm:$0xff]  ;;  %v185_v23 = vld [vmem:[%s437_s20 + $0x58] sm:$0xff] }
  0x14   : > { %v255_v24 = vadd.f32 %v442_v1, %v216_v11  ;;  %v256_v25 = vadd.f32 %v442_v1, %v217_v12  ;;  %v257_v26 = vadd.f32 %v442_v1, %v218_v13  ;;  %v220_v27 = vmul.f32 %v432_v0, %v181_v15  ;;  %v186_v28 = vld [vmem:[%s437_s20 + $0x60] sm:$0xff]  ;;  %v187_v29 = vld [vmem:[%s437_s20 + $0x68] sm:$0xff]  ;;  %v188_v30 = vld [vmem:[%s437_s20 + $0x70] sm:$0xff] }
  0x15   : > { %284 = vst [vmem:[%s456_s25] sm:$0xff] %v252_v17  ;;  %285 = vst [vmem:[%s456_s25 + $0x8] sm:$0xff] %v253_v18  ;;  %v258_v31 = vadd.f32 %v442_v1, %v219_v20  ;;  %v221_v32 = vmul.f32 %v432_v0, %v182_v16  ;;  %v222_v33 = vmul.f32 %v432_v0, %v183_v21  ;;  %v189_v35 = vld [vmem:[%s437_s20 + $0x78] sm:$0xff]  ;;  %v190_v40 = vld [vmem:[%s437_s20 + $0x80] sm:$0xff] }
  0x16   : > { %286 = vst [vmem:[%s456_s25 + $0x10] sm:$0xff] %v254_v19  ;;  %v223_v34 = vmul.f32 %v432_v0, %v184_v22  ;;  %287 = vst [vmem:[%s456_s25 + $0x18] sm:$0xff] %v255_v24  ;;  %v259_v36 = vadd.f32 %v442_v1, %v220_v27  ;;  %v224_v37 = vmul.f32 %v432_v0, %v185_v23  ;;  %v191_v41 = vld [vmem:[%s437_s20 + $0x88] sm:$0xff]  ;;  %v192_v42 = vld [vmem:[%s437_s20 + $0x90] sm:$0xff] }
  0x17   : > { %288 = vst [vmem:[%s456_s25 + $0x20] sm:$0xff] %v256_v25  ;;  %289 = vst [vmem:[%s456_s25 + $0x28] sm:$0xff] %v257_v26  ;;  %v225_v38 = vmul.f32 %v432_v0, %v186_v28  ;;  %v226_v39 = vmul.f32 %v432_v0, %v187_v29  ;;  %v260_v43 = vadd.f32 %v442_v1, %v221_v32  ;;  %v193_v47 = vld [vmem:[%s437_s20 + $0x98] sm:$0xff]  ;;  %v194_v48 = vld [vmem:[%s437_s20 + $0xa0] sm:$0xff] }
  0x18   : > { %290 = vst [vmem:[%s456_s25 + $0x30] sm:$0xff] %v258_v31  ;;  %v261_v44 = vadd.f32 %v442_v1, %v222_v33  ;;  %v262_v45 = vadd.f32 %v442_v1, %v223_v34  ;;  %v227_v46 = vmul.f32 %v432_v0, %v188_v30  ;;  %v195_v49 = vld [vmem:[%s437_s20 + $0xa8] sm:$0xff]  ;;  %291 = vst [vmem:[%s456_s25 + $0x38] sm:$0xff] %v259_v36  ;;  %v196_v54 = vld [vmem:[%s437_s20 + $0xb0] sm:$0xff] }
  0x19   : > { %v263_v50 = vadd.f32 %v442_v1, %v224_v37  ;;  %v264_v51 = vadd.f32 %v442_v1, %v225_v38  ;;  %v265_v52 = vadd.f32 %v442_v1, %v226_v39  ;;  %v228_v53 = vmul.f32 %v432_v0, %v189_v35  ;;  %292 = vst [vmem:[%s456_s25 + $0x40] sm:$0xff] %v260_v43  ;;  %v197_v59 = vld [vmem:[%s437_s20 + $0xb8] sm:$0xff]  ;;  %v198_v2 = vld [vmem:[%s437_s20 + $0xc0] sm:$0xff]  ;;  %v199_v3 = vld [vmem:[%s437_s20 + $0xc8] sm:$0xff] }
  0x1a   : > { %293 = vst [vmem:[%s456_s25 + $0x48] sm:$0xff] %v261_v44  ;;  %294 = vst [vmem:[%s456_s25 + $0x50] sm:$0xff] %v262_v45  ;;  %v266_v55 = vadd.f32 %v442_v1, %v227_v46  ;;  %v229_v56 = vmul.f32 %v432_v0, %v190_v40  ;;  %v230_v57 = vmul.f32 %v432_v0, %v191_v41  ;;  %v200_v4 = vld [vmem:[%s437_s20 + $0xd0] sm:$0xff]  ;;  %v201_v9 = vld [vmem:[%s437_s20 + $0xd8] sm:$0xff] }
  0x1b   : > { %v231_v58 = vmul.f32 %v432_v0, %v192_v42  ;;  %295 = vst [vmem:[%s456_s25 + $0x58] sm:$0xff] %v263_v50  ;;  %296 = vst [vmem:[%s456_s25 + $0x60] sm:$0xff] %v264_v51  ;;  %v267_v60 = vadd.f32 %v442_v1, %v228_v53  ;;  %v232_v61 = vmul.f32 %v432_v0, %v193_v47  ;;  %v202_v10 = vld [vmem:[%s437_s20 + $0xe0] sm:$0xff]  ;;  %v203_v11 = vld [vmem:[%s437_s20 + $0xe8] sm:$0xff] }
  0x1c   : > { %297 = vst [vmem:[%s456_s25 + $0x68] sm:$0xff] %v265_v52  ;;  %v233_v62 = vmul.f32 %v432_v0, %v194_v48  ;;  %v234_v63 = vmul.f32 %v432_v0, %v195_v49  ;;  %298 = vst [vmem:[%s456_s25 + $0x70] sm:$0xff] %v266_v55  ;;  %v268_v5 = vadd.f32 %v442_v1, %v229_v56  ;;  %v204_v16 = vld [vmem:[%s437_s20 + $0xf0] sm:$0xff]  ;;  %v205_v21 = vld [vmem:[%s437_s20 + $0xf8] sm:$0xff] }
  0x1d   : > { %v269_v6 = vadd.f32 %v442_v1, %v230_v57  ;;  %v270_v7 = vadd.f32 %v442_v1, %v231_v58  ;;  %v235_v8 = vmul.f32 %v432_v0, %v196_v54  ;;  %299 = vst [vmem:[%s456_s25 + $0x78] sm:$0xff] %v267_v60  ;;  %v271_v12 = vadd.f32 %v442_v1, %v232_v61 }
  0x1e   : > { %v272_v13 = vadd.f32 %v442_v1, %v233_v62  ;;  %v273_v14 = vadd.f32 %v442_v1, %v234_v63  ;;  %v236_v15 = vmul.f32 %v432_v0, %v197_v59  ;;  %300 = vst [vmem:[%s456_s25 + $0x80] sm:$0xff] %v268_v5  ;;  %v237_v18 = vmul.f32 %v432_v0, %v198_v2 }
  0x1f   : > { %301 = vst [vmem:[%s456_s25 + $0x88] sm:$0xff] %v269_v6  ;;  %302 = vst [vmem:[%s456_s25 + $0x90] sm:$0xff] %v270_v7  ;;  %v274_v17 = vadd.f32 %v442_v1, %v235_v8  ;;  %v238_v19 = vmul.f32 %v432_v0, %v199_v3  ;;  %v239_v20 = vmul.f32 %v432_v0, %v200_v4 }
  0x20   : > { %303 = vst [vmem:[%s456_s25 + $0x98] sm:$0xff] %v271_v12  ;;  %304 = vst [vmem:[%s456_s25 + $0xa0] sm:$0xff] %v272_v13  ;;  %v275_v22 = vadd.f32 %v442_v1, %v236_v15  ;;  %v240_v23 = vmul.f32 %v432_v0, %v201_v9  ;;  %v241_v24 = vmul.f32 %v432_v0, %v202_v10 }
  0x21   : > { %305 = vst [vmem:[%s456_s25 + $0xa8] sm:$0xff] %v273_v14  ;;  %v242_v25 = vmul.f32 %v432_v0, %v203_v11  ;;  %306 = vst [vmem:[%s456_s25 + $0xb0] sm:$0xff] %v274_v17  ;;  %v276_v26 = vadd.f32 %v442_v1, %v237_v18  ;;  %v277_v27 = vadd.f32 %v442_v1, %v238_v19 }
  0x22   : > { %v278_v28 = vadd.f32 %v442_v1, %v239_v20  ;;  %v243_v29 = vmul.f32 %v432_v0, %v204_v16  ;;  %307 = vst [vmem:[%s456_s25 + $0xb8] sm:$0xff] %v275_v22  ;;  %v279_v30 = vadd.f32 %v442_v1, %v240_v23  ;;  %v280_v31 = vadd.f32 %v442_v1, %v241_v24 }
  0x23   : > { %v281_v32 = vadd.f32 %v442_v1, %v242_v25  ;;  %v244_v33 = vmul.f32 %v432_v0, %v205_v21  ;;  %308 = vst [vmem:[%s456_s25 + $0xc0] sm:$0xff] %v276_v26  ;;  %309 = vst [vmem:[%s456_s25 + $0xc8] sm:$0xff] %v277_v27 }
  0x24   : > { %310 = vst [vmem:[%s456_s25 + $0xd0] sm:$0xff] %v278_v28  ;;  %v282_v34 = vadd.f32 %v442_v1, %v243_v29  ;;  %311 = vst [vmem:[%s456_s25 + $0xd8] sm:$0xff] %v279_v30 }
  0x25   : > { %312 = vst [vmem:[%s456_s25 + $0xe0] sm:$0xff] %v280_v31  ;;  %313 = vst [vmem:[%s456_s25 + $0xe8] sm:$0xff] %v281_v32  ;;  %v283_v35 = vadd.f32 %v442_v1, %v244_v33 }
  0x26   : > { %314 = vst [vmem:[%s456_s25 + $0xf0] sm:$0xff] %v282_v34 }
  0x27   : > { %315 = vst [vmem:[%s456_s25 + $0xf8] sm:$0xff] %v283_v35 }
  0x28 PF: > { %s13_s12 = sadd.s32 1, %s399_s12  }
  0x29   : > { %p10_p4 = scmp.ge.s32.totalorder %s13_s12, 4  }
  0x2b   :  { %12 = sbr.rel (!%p10_p4) target bundleno = 1 (0x1), region = 62 }

// kernel: conv_bn_forward.2
= control target key start
LH: loop header
LB: loop body
LE: loop exit
PB: predicated region body
PF: predicated region fallthrough
CT: control target
= control target key end

     0   :  { %s927_s12 = smov 0   ;;  %s1099_s0 = inlined_call_operand.vmem [shape: bf16[512,48], index: 0, kind: input, shape index: {}]   ;;  %s1100_s1 = inlined_call_operand.vmem [shape: bf16[48,128], index: 1, kind: input, shape index: {}]   ;;  %s1101_s2 = inlined_call_operand.vmem [shape: f32[512,128], index: 2, kind: output, shape index: {0}]   ;;  %s1102_s3 = inlined_call_operand.vmem [shape: f32[2,8,128], index: 3, kind: output, shape index: {1}]  }
   0x1 LB: > { %s933_s13 = sadd.s32 4294967295, %s905_s12   ;;  %p766_p0 = scmp.ge.s32.totalorder %s905_s12, 1  ;;  %s905_s12 = sphi %s927_s12, %s14_s12  }
   0x2   : > { %p141_p1 = scmp.lt.s32.totalorder %s905_s12, 3 }
   0x4   : > { %p142_p2 = pnand %p766_p0, %p141_p1 }
   0x5   : > { %v880_v0 = vld [vmem:[%s1100_s1] sm:$0xff] (!%p142_p2)   ;;  %s767_s16 = sshll.u32 (!%p142_p2), %s933_s13, 5  ;;  %v881_v1 = vld [vmem:[%s1100_s1 + $0x8] sm:$0xff] (!%p142_p2)   ;;  %v882_v2 = vld [vmem:[%s1100_s1 + $0x10] sm:$0xff] (!%p142_p2)   ;;  %vm322_vm0 = vcmask (!%p142_p2), 392192   ;;  %p181_p4 = scmp.lt.s32.totalorder (!%p142_p2), %s933_s13, 1 }
   0x6   : > { %145 = sbr.rel (%p142_p2) target bundleno = 312 (0x138), region = 28  ;;  %p170_p3 = scmp.lt.s32.totalorder (!%p142_p2), %s767_s16, 63  ;;  %828 = vmatprep.subr.bf16.mxu0 (!%p142_p2), %v880_v0  ;;  %866 = vmatprep.subr.bf16.mxu1 (!%p142_p2), %v880_v0  ;;  %vm670_vm1 = vcmask (!%p142_p2), 1040384   ;;  %vm672_vm2 = vcmask (!%p142_p2), 1041408  }
   0x7   : > { %829 = vmatpush3.bf16.msra.mxu0 (!%p142_p2), %v880_v0  ;;  %869 = vmatpush3.bf16.msra.mxu1 (!%p142_p2), %v880_v0 }
   0x8   : > { %830 = vmatprep.subr.bf16.mxu0 (!%p142_p2), %v881_v1  ;;  %867 = vmatprep.subr.bf16.mxu1 (!%p142_p2), %v881_v1 }
   0xb   : > { %831 = vmatpush3.bf16.msra.mxu0 (!%p142_p2), %v881_v1  ;;  %870 = vmatpush3.bf16.msra.mxu1 (!%p142_p2), %v881_v1 }
   0xc   : > { %832 = vmatprep.subr.bf16.mxu0 (!%p142_p2), %v882_v2  ;;  %868 = vmatprep.subr.bf16.mxu1 (!%p142_p2), %v882_v2 }
   0xd   : > { %s1104_s16 = smov (!%p170_p3, %s767_s16), 63  ;;  %s1106_s13 = smov (!%p181_p4, %s933_s13), 1 }
   0xe   : > { %s768_s21 = sshll.u32 %s1104_s16, 2  ;;  %s770_s25 = sshll.u32 %s1104_s16, 3 }
   0xf   : > { %s953_s24 = scalar_lea.vmem %s1099_s0, %s768_s21  ;;  %833 = vmatpush3.bf16.msra.mxu0 %v882_v2  ;;  %871 = vmatpush3.bf16.msra.mxu1 %v882_v2  ;;  %s991_s28 = scalar_lea.vmem %s1101_s2, %s770_s25 }
  0x10   : > { %v883_v3 = vld [vmem:[%s953_s24] sm:$0xff]   ;;  %v884_v4 = vld [vmem:[%s953_s24 + $0x8] sm:$0xff]   ;;  %v885_v5 = vld [vmem:[%s953_s24 + $0x10] sm:$0xff]   ;;  %s771_s29 = sshll.u32 %s1106_s13, 3 }
  0x11   : > { %834 = vmatprep.mubr.msk.bf16.mxu0 %vm322_vm0, %v883_v3  ;;  %v891_v6 = vld [vmem:[%s953_s24 + $0x40] sm:$0xff]   ;;  %v892_v7 = vld [vmem:[%s953_s24 + $0x48] sm:$0xff]   ;;  %v893_v8 = vld [vmem:[%s953_s24 + $0x50] sm:$0xff]   ;;  %s184_s5 = scalar_lea.vmem %s1102_s3, %s771_s29 }
  0x12   : > { %835 = vmatmul.mubr.msk.bf16.vlgmr.msra.gmra.mrb[0].mxu0 %vm322_vm0, %v884_v4  ;;  %850 = vmatprep.mubr.msk.bf16.mxu1 %vm322_vm0, %v891_v6  ;;  %v886_v9 = vld [vmem:[%s953_s24 + $0x18] sm:$0xff]   ;;  %v887_v10 = vld [vmem:[%s953_s24 + $0x20] sm:$0xff]   ;;  %v888_v13 = vld [vmem:[%s953_s24 + $0x28] sm:$0xff]  }
  0x13   : > { %838 = vmatprep.mubr.msk.bf16.mxu0 %vm322_vm0, %v885_v5  ;;  %851 = vmatmul.mubr.msk.bf16.vlgmr.msra.gmra.mrb[0].mxu1 %vm322_vm0, %v892_v7  ;;  %v894_v11 = vld [vmem:[%s953_s24 + $0x58] sm:$0xff]   ;;  %v895_v12 = vld [vmem:[%s953_s24 + $0x60] sm:$0xff]   ;;  %v889_v14 = vld [vmem:[%s953_s24 + $0x30] sm:$0xff]  }
  0x14   : > { %854 = vmatprep.mubr.msk.bf16.mxu1 %vm322_vm0, %v893_v8  ;;  %v896_v15 = vld [vmem:[%s953_s24 + $0x68] sm:$0xff]   ;;  %v897_v16 = vld [vmem:[%s953_s24 + $0x70] sm:$0xff]   ;;  %v890_v17 = vld [vmem:[%s953_s24 + $0x38] sm:$0xff]  }
  0x15   : > { %v898_v18 = vld [vmem:[%s953_s24 + $0x78] sm:$0xff]  }
  0x1a   : > { %839 = vmatmul.mubr.msk.bf16.gmra.mrb[4].mxu0 %vm322_vm0, %v886_v9 }
  0x1b   : > { %842 = vmatprep.mubr.msk.bf16.mxu0 %vm322_vm0, %v887_v10  ;;  %855 = vmatmul.mubr.msk.bf16.gmra.mrb[4].mxu1 %vm322_vm0, %v894_v11 }
  0x1c   : > { %858 = vmatprep.mubr.msk.bf16.mxu1 %vm322_vm0, %v895_v12 }
  0x22   : > { %843 = vmatmul.mubr.msk.bf16.gmra.mrb[8].mxu0 %vm322_vm0, %v888_v13 }
  0x23   : > { %846 = vmatprep.mubr.msk.bf16.mxu0 %vm322_vm0, %v889_v14  ;;  %859 = vmatmul.mubr.msk.bf16.gmra.mrb[8].mxu1 %vm322_vm0, %v896_v15 }
  0x24   : > { %862 = vmatprep.mubr.msk.bf16.mxu1 %vm322_vm0, %v897_v16 }
  0x2a   : > { %847 = vmatmul.mubr.msk.bf16.gmra.mrb[12].mxu0 %vm322_vm0, %v890_v17 }
  0x2b   : > { %863 = vmatmul.mubr.msk.bf16.gmra.mrb[12].mxu1 %vm322_vm0, %v898_v18 }
  0xe5   : > { %v836_v19 = vpop.f32.mrb[0].mxu0 }
  0xe6   : > { %534 = vst [vmem:[%s991_s28 + $0x10] sm:$0xff] %v836_v19  ;;  %v405_v20 = vpop.f32.mrb[1].mxu0  ;;  %v997_v26 = vpop.f32.mrb[0].mxu1  ;;  %v603_v28 = vmul.f32 %v836_v19, %v836_v19 }
  0xe7   : > { %532 = vst [vmem:[%s991_s28] sm:$0xff] %v405_v20  ;;  %v837_v21 = vpop.f32.mrb[2].mxu0  ;;  %v601_v23 = vmul.f32 %v405_v20, %v405_v20  ;;  %550 = vst [vmem:[%s991_s28 + $0x90] sm:$0xff] %v997_v26  ;;  %v1001_v27 = vpop.f32.mrb[1].mxu1 }
  0xe8   : > { %535 = vst [vmem:[%s991_s28 + $0x18] sm:$0xff] %v837_v21  ;;  %v408_v22 = vpop.f32.mrb[3].mxu0  ;;  %548 = vst [vmem:[%s991_s28 + $0x80] sm:$0xff] %v1001_v27  ;;  %v1005_v31 = vpop.f32.mrb[2].mxu1  ;;  %v604_v33 = vmul.f32 %v837_v21, %v837_v21 }
  0xe9   : > { %533 = vst [vmem:[%s991_s28 + $0x8] sm:$0xff] %v408_v22  ;;  %v564_v24 = vadd.f32 %v408_v22, %v405_v20  ;;  %v602_v25 = vmul.f32 %v408_v22, %v408_v22  ;;  %551 = vst [vmem:[%s991_s28 + $0x98] sm:$0xff] %v1005_v31  ;;  %v1009_v32 = vpop.f32.mrb[3].mxu1 }
  0xea   : > { %549 = vst [vmem:[%s991_s28 + $0x88] sm:$0xff] %v1009_v32 }
  0xeb   : > { %v565_v29 = vadd.f32 %v836_v19, %v564_v24  ;;  %v633_v30 = vadd.f32 %v602_v25, %v601_v23 }
  0xed   : > { %v634_v34 = vadd.f32 %v633_v30, %v603_v28  ;;  %v840_v35 = vpop.f32.mrb[4].mxu0  ;;  %v566_v36 = vadd.f32 %v837_v21, %v565_v29 }
  0xee   : > { %538 = vst [vmem:[%s991_s28 + $0x30] sm:$0xff] %v840_v35  ;;  %v421_v37 = vpop.f32.mrb[5].mxu0  ;;  %v1017_v46 = vpop.f32.mrb[4].mxu1  ;;  %v607_v48 = vmul.f32 %v840_v35, %v840_v35 }
  0xef   : > { %536 = vst [vmem:[%s991_s28 + $0x20] sm:$0xff] %v421_v37  ;;  %v567_v38 = vadd.f32 %v566_v36, %v421_v37  ;;  %v605_v39 = vmul.f32 %v421_v37, %v421_v37  ;;  %v635_v40 = vadd.f32 %v634_v34, %v604_v33  ;;  %v841_v41 = vpop.f32.mrb[6].mxu0  ;;  %554 = vst [vmem:[%s991_s28 + $0xb0] sm:$0xff] %v1017_v46  ;;  %v1021_v47 = vpop.f32.mrb[5].mxu1 }
  0xf0   : > { %539 = vst [vmem:[%s991_s28 + $0x38] sm:$0xff] %v841_v41  ;;  %v424_v42 = vpop.f32.mrb[7].mxu0  ;;  %552 = vst [vmem:[%s991_s28 + $0xa0] sm:$0xff] %v1021_v47  ;;  %v1025_v51 = vpop.f32.mrb[6].mxu1  ;;  %v608_v53 = vmul.f32 %v841_v41, %v841_v41  ;;  %v617_v36 = vmul.f32 %v1001_v27, %v1001_v27 }
  0xf1   : > { %v636_v43 = vadd.f32 %v635_v40, %v605_v39  ;;  %537 = vst [vmem:[%s991_s28 + $0x28] sm:$0xff] %v424_v42  ;;  %v568_v44 = vadd.f32 %v567_v38, %v424_v42  ;;  %v606_v45 = vmul.f32 %v424_v42, %v424_v42  ;;  %555 = vst [vmem:[%s991_s28 + $0xb8] sm:$0xff] %v1025_v51  ;;  %v1029_v52 = vpop.f32.mrb[7].mxu1 }
  0xf2   : > { %553 = vst [vmem:[%s991_s28 + $0xa8] sm:$0xff] %v1029_v52  ;;  %v619_v42 = vmul.f32 %v997_v26, %v997_v26 }
  0xf3   : > { %v569_v49 = vadd.f32 %v840_v35, %v568_v44  ;;  %v637_v50 = vadd.f32 %v636_v43, %v606_v45  ;;  %v620_v45 = vmul.f32 %v1005_v31, %v1005_v31 }
  0xf5   : > { %v638_v54 = vadd.f32 %v637_v50, %v607_v48  ;;  %v844_v55 = vpop.f32.mrb[8].mxu0  ;;  %v570_v56 = vadd.f32 %v841_v41, %v569_v49  ;;  %v618_v41 = vmul.f32 %v1009_v32, %v1009_v32 }
  0xf6   : > { %542 = vst [vmem:[%s991_s28 + $0x50] sm:$0xff] %v844_v55  ;;  %v437_v57 = vpop.f32.mrb[9].mxu0  ;;  %v1037_v2 = vpop.f32.mrb[8].mxu1  ;;  %v611_v4 = vmul.f32 %v844_v55, %v844_v55 }
  0xf7   : > { %540 = vst [vmem:[%s991_s28 + $0x40] sm:$0xff] %v437_v57  ;;  %v571_v58 = vadd.f32 %v570_v56, %v437_v57  ;;  %v609_v59 = vmul.f32 %v437_v57, %v437_v57  ;;  %v639_v60 = vadd.f32 %v638_v54, %v608_v53  ;;  %v845_v61 = vpop.f32.mrb[10].mxu0  ;;  %558 = vst [vmem:[%s991_s28 + $0xd0] sm:$0xff] %v1037_v2  ;;  %v1041_v3 = vpop.f32.mrb[9].mxu1 }
  0xf8   : > { %543 = vst [vmem:[%s991_s28 + $0x58] sm:$0xff] %v845_v61  ;;  %v440_v62 = vpop.f32.mrb[11].mxu0  ;;  %556 = vst [vmem:[%s991_s28 + $0xc0] sm:$0xff] %v1041_v3  ;;  %v1045_v7 = vpop.f32.mrb[10].mxu1  ;;  %v612_v9 = vmul.f32 %v845_v61, %v845_v61 }
  0xf9   : > { %v640_v63 = vadd.f32 %v639_v60, %v609_v59  ;;  %541 = vst [vmem:[%s991_s28 + $0x48] sm:$0xff] %v440_v62  ;;  %v572_v0 = vadd.f32 %v571_v58, %v440_v62  ;;  %v610_v1 = vmul.f32 %v440_v62, %v440_v62  ;;  %559 = vst [vmem:[%s991_s28 + $0xd8] sm:$0xff] %v1045_v7  ;;  %v504_v8 = vpop.f32.mrb[11].mxu1 }
  0xfa   : > { %557 = vst [vmem:[%s991_s28 + $0xc8] sm:$0xff] %v504_v8 }
  0xfb   : > { %v573_v5 = vadd.f32 %v844_v55, %v572_v0  ;;  %v641_v6 = vadd.f32 %v640_v63, %v610_v1  ;;  %v622_v55 = vmul.f32 %v1029_v52, %v1029_v52  ;;  %v626_v63 = vmul.f32 %v504_v8, %v504_v8 }
  0xfc   : > { %v627_v0 = vmul.f32 %v1037_v2, %v1037_v2 }
  0xfd   : > { %v642_v10 = vadd.f32 %v641_v6, %v611_v4  ;;  %v848_v11 = vpop.f32.mrb[12].mxu0  ;;  %v574_v12 = vadd.f32 %v845_v61, %v573_v5  ;;  %v628_v4 = vmul.f32 %v1045_v7, %v1045_v7 }
  0xfe   : > { %546 = vst [vmem:[%s991_s28 + $0x70] sm:$0xff] %v848_v11  ;;  %v453_v13 = vpop.f32.mrb[13].mxu0  ;;  %v864_v22 = vpop.f32.mrb[12].mxu1  ;;  %v615_v24 = vmul.f32 %v848_v11, %v848_v11 }
  0xff   : > { %544 = vst [vmem:[%s991_s28 + $0x60] sm:$0xff] %v453_v13  ;;  %v575_v14 = vadd.f32 %v574_v12, %v453_v13  ;;  %v613_v15 = vmul.f32 %v453_v13, %v453_v13  ;;  %v643_v16 = vadd.f32 %v642_v10, %v612_v9  ;;  %v849_v17 = vpop.f32.mrb[14].mxu0  ;;  %562 = vst [vmem:[%s991_s28 + $0xf0] sm:$0xff] %v864_v22  ;;  %v517_v23 = vpop.f32.mrb[13].mxu1 }
 0x100   : > { %547 = vst [vmem:[%s991_s28 + $0x78] sm:$0xff] %v849_v17  ;;  %v456_v18 = vpop.f32.mrb[15].mxu0  ;;  %560 = vst [vmem:[%s991_s28 + $0xe0] sm:$0xff] %v517_v23  ;;  %v865_v29 = vpop.f32.mrb[14].mxu1  ;;  %v616_v33 = vmul.f32 %v849_v17, %v849_v17  ;;  %v629_v6 = vmul.f32 %v517_v23, %v517_v23  ;;  %v631_v12 = vmul.f32 %v864_v22, %v864_v22 }
 0x101   : > { %v644_v19 = vadd.f32 %v643_v16, %v613_v15  ;;  %545 = vst [vmem:[%s991_s28 + $0x68] sm:$0xff] %v456_v18  ;;  %v576_v20 = vadd.f32 %v575_v14, %v456_v18  ;;  %v614_v21 = vmul.f32 %v456_v18, %v456_v18  ;;  %563 = vst [vmem:[%s991_s28 + $0xf8] sm:$0xff] %v865_v29  ;;  %v520_v30 = vpop.f32.mrb[15].mxu1 }
 0x102   : > { %561 = vst [vmem:[%s991_s28 + $0xe8] sm:$0xff] %v520_v30  ;;  %v632_v15 = vmul.f32 %v865_v29, %v865_v29 }
 0x103   : > { %v577_v25 = vadd.f32 %v848_v11, %v576_v20  ;;  %v645_v28 = vadd.f32 %v644_v19, %v614_v21 }
 0x105   : > { %v646_v34 = vadd.f32 %v645_v28, %v615_v24  ;;  %v578_v35 = vadd.f32 %v849_v17, %v577_v25 }
 0x107   : > { %v579_v37 = vadd.f32 %v578_v35, %v1001_v27  ;;  %v647_v38 = vadd.f32 %v646_v34, %v616_v33  ;;  %v621_v27 = vmul.f32 %v1021_v47, %v1021_v47 }
 0x109   : > { %v648_v39 = vadd.f32 %v647_v38, %v617_v36  ;;  %v580_v40 = vadd.f32 %v579_v37, %v1009_v32 }
 0x10b   : > { %v581_v43 = vadd.f32 %v997_v26, %v580_v40  ;;  %v649_v44 = vadd.f32 %v648_v39, %v618_v41  ;;  %v623_v26 = vmul.f32 %v1017_v46, %v1017_v46 }
 0x10d   : > { %v650_v48 = vadd.f32 %v649_v44, %v619_v42  ;;  %v582_v49 = vadd.f32 %v1005_v31, %v581_v43  ;;  %v624_v31 = vmul.f32 %v1025_v51, %v1025_v51 }
 0x10f   : > { %v583_v50 = vadd.f32 %v582_v49, %v1021_v47  ;;  %v651_v53 = vadd.f32 %v650_v48, %v620_v45  ;;  %v625_v47 = vmul.f32 %v1041_v3, %v1041_v3 }
 0x111   : > { %v652_v54 = vadd.f32 %v651_v53, %v621_v27  ;;  %v584_v32 = vadd.f32 %v583_v50, %v1029_v52 }
 0x113   : > { %v585_v56 = vadd.f32 %v1017_v46, %v584_v32  ;;  %v653_v57 = vadd.f32 %v652_v54, %v622_v55 }
 0x115   : > { %v654_v58 = vadd.f32 %v653_v57, %v623_v26  ;;  %v586_v59 = vadd.f32 %v1025_v51, %v585_v56 }
 0x117   : > { %v587_v60 = vadd.f32 %v586_v59, %v1041_v3  ;;  %v655_v61 = vadd.f32 %v654_v58, %v624_v31 }
 0x119   : > { %v656_v62 = vadd.f32 %v655_v61, %v625_v47  ;;  %v588_v52 = vadd.f32 %v587_v60, %v504_v8  ;;  %v630_v8 = vmul.f32 %v520_v30, %v520_v30 }
 0x11b   : > { %v589_v46 = vadd.f32 %v1037_v2, %v588_v52  ;;  %v657_v1 = vadd.f32 %v656_v62, %v626_v63 }
 0x11d   : > { %v658_v5 = vadd.f32 %v657_v1, %v627_v0  ;;  %v590_v51 = vadd.f32 %v1045_v7, %v589_v46 }
 0x11f   : > { %v591_v9 = vadd.f32 %v590_v51, %v517_v23  ;;  %v659_v3 = vadd.f32 %v658_v5, %v628_v4 }
 0x121   : > { %v660_v10 = vadd.f32 %v659_v3, %v629_v6  ;;  %v592_v11 = vadd.f32 %v591_v9, %v520_v30 }
 0x123   : > { %v593_v13 = vadd.f32 %v864_v22, %v592_v11  ;;  %v661_v14 = vadd.f32 %v660_v10, %v630_v8 }
 0x125   : > { %v594_v2 = vadd.f32 %v865_v29, %v593_v13  ;;  %v662_v16 = vadd.f32 %v661_v14, %v631_v12 }
 0x127   : > { %v595_v17 = vrot.slane %v594_v2, 4  ;;  %v663_v18 = vadd.f32 %v662_v16, %v632_v15 }
 0x129   : > { %v596_v19 = vadd.f32 %v595_v17, %v594_v2  ;;  %v664_v20 = vrot.slane %v663_v18, 4 }
 0x12b   : > { %v597_v21 = vrot.slane %v596_v19, 2  ;;  %v665_v7 = vadd.f32 %v664_v20, %v663_v18 }
 0x12d   : > { %v598_v23 = vadd.f32 %v597_v21, %v596_v19  ;;  %v666_v24 = vrot.slane %v665_v7, 2 }
 0x12f   : > { %v599_v25 = vrot.slane %v598_v23, 1  ;;  %v667_v28 = vadd.f32 %v666_v24, %v665_v7 }
 0x131   : > { %v668_v30 = vrot.slane %v667_v28, 1  ;;  %v600_v22 = vadd.f32 %v599_v25, %v598_v23 }
 0x133   : > { %v669_v33 = vadd.f32 %v668_v30, %v667_v28 }
 0x135   : > { %v671_v29 = vsel %vm670_vm1, %v600_v22, %v669_v33 }
 0x136   : > { %v673_v34 = vsel %vm672_vm2, %v671_v29, 0.0 }
 0x137   : > { %674 = vst [vmem:[%s184_s5] sm:$0xff] %v673_v34 }
 0x138 PF: > { %s14_s12 = sadd.s32 1, %s905_s12  }
 0x139   : > { %p11_p5 = scmp.ge.s32.totalorder %s14_s12, 4  }
 0x13b   :  { %13 = sbr.rel (!%p11_p5) target bundleno = 1 (0x1), region = 70 }

</bundles_post_ra>
